<compile_context>
chip_gen: v6e
topology: v6e:2x2x1
jax: 0.10.0
libtpu: 0.0.40
codegen_flags: <defaults>
</compile_context>

<pallas_src>
import functools
import math

import jax
import jax.numpy as jnp
from jax import lax
from jax.experimental import pallas as pl
from jax.experimental.pallas import tpu as pltpu


_VMEM_LIMIT = 48 * 1024 * 1024  # leaves headroom on v7x (64 MiB physical VMEM)


def _round_up(x, m):
    return ((x + m - 1) // m) * m


def _pad2(a, rows, cols):
    r, c = a.shape
    return jnp.pad(a, ((0, rows - r), (0, cols - c)))


def _pick_tile(dim, candidates=(512, 256, 128)):
    for t in candidates:
        if dim % t == 0:
            return t
    return dim  # dim is always a multiple of 128 here


# --------------------------------------------------------------------------
# GCN layer: out = maybe_relu(adj @ (x @ W) + b), row-tiled over adj
# --------------------------------------------------------------------------
def gcn_layer_kernel(x_ref, w_ref, b_ref, adj_ref, out_ref, s_ref, *, apply_relu):
    # s = x @ W stays resident in VMEM scratch; computed once at grid step 0.
    @pl.when(pl.program_id(0) == 0)
    def _():
        s_ref[...] = jnp.dot(
            x_ref[...], w_ref[...], preferred_element_type=jnp.float32
        ).astype(s_ref.dtype)

    # Stream one row strip of adj per grid step; bf16 MXU, f32 accumulate.
    h = jnp.dot(adj_ref[...], s_ref[...], preferred_element_type=jnp.float32)
    h = h + b_ref[...]
    if apply_relu:
        h = jnp.maximum(h, 0.0)
    out_ref[...] = h.astype(out_ref.dtype)


def _gcn_layer(x, adj, w, b, *, apply_relu):
    np_, f = x.shape
    h = w.shape[1]
    tm = _pick_tile(np_)
    grid = (np_ // tm,)

    kernel = functools.partial(gcn_layer_kernel, apply_relu=apply_relu)
    return pl.pallas_call(
        kernel,
        out_shape=jax.ShapeDtypeStruct((np_, h), jnp.bfloat16),
        grid=grid,
        in_specs=[
            pl.BlockSpec((np_, f), lambda i: (0, 0)),    # x  (resident)
            pl.BlockSpec((f, h), lambda i: (0, 0)),      # W  (resident)
            pl.BlockSpec((1, h), lambda i: (0, 0)),      # b  (resident)
            pl.BlockSpec((tm, np_), lambda i: (i, 0)),   # adj row strip (streamed)
        ],
        out_specs=pl.BlockSpec((tm, h), lambda i: (i, 0)),
        scratch_shapes=[pltpu.VMEM((np_, h), jnp.bfloat16)],  # s = x @ W
        compiler_params=pltpu.CompilerParams(
            # scratch s is written at step 0 and reused -> keep axis arbitrary
            dimension_semantics=("arbitrary",),
            vmem_limit_bytes=_VMEM_LIMIT,
        ),
    )(x, w, b, adj)


# --------------------------------------------------------------------------
# Dot-product decoder: A_pred = sigmoid(z @ z.T), 2-D tiled over the output
# --------------------------------------------------------------------------
def decoder_kernel(zi_ref, zj_ref, out_ref):
    # Contract on axis 1 of both operands: no explicit transpose of z.
    logits = lax.dot_general(
        zi_ref[...],
        zj_ref[...],
        dimension_numbers=(((1,), (1,)), ((), ())),
        preferred_element_type=jnp.float32,
    )
    out_ref[...] = jax.nn.sigmoid(logits)


def _decoder(z):
    np_, cp = z.shape
    tm = _pick_tile(np_)
    tn = _pick_tile(np_)
    grid = (np_ // tm, np_ // tn)

    return pl.pallas_call(
        decoder_kernel,
        # TODO(synk): on v5e a bf16 output would halve the dominant HBM
        # writeback; kept f32 here to match the reference dtype.
        out_shape=jax.ShapeDtypeStruct((np_, np_), jnp.float32),
        grid=grid,
        in_specs=[
            pl.BlockSpec((tm, cp), lambda i, j: (i, 0)),   # z row strip i
            pl.BlockSpec((tn, cp), lambda i, j: (j, 0)),   # z row strip j
        ],
        out_specs=pl.BlockSpec((tm, tn), lambda i, j: (i, j)),
        compiler_params=pltpu.CompilerParams(
            dimension_semantics=("parallel", "parallel"),  # megacore on v7x
            vmem_limit_bytes=_VMEM_LIMIT,
        ),
    )(z, z)


# --------------------------------------------------------------------------
# Wrapper
# --------------------------------------------------------------------------
def gcn_link_forward(x, adj, w1, b1, w2, b2):
    """GCN_Link forward. Pads all dims to 128 multiples, runs tiled kernels."""
    n, nfeat = x.shape
    nhid = w1.shape[1]
    nclass = w2.shape[1]

    np_ = _round_up(n, 128)
    fp = _round_up(nfeat, 128)
    hp = _round_up(nhid, 128)
    cp = _round_up(nclass, 128)

    # Zero padding: padded adj rows/cols and padded weight columns are zero,
    # so the top-left NxN block of A_pred is exact (sliced out below).
    # MXU operands in bf16, biases stay f32 (added into f32 accumulators).
    x_p = _pad2(x, np_, fp).astype(jnp.bfloat16)
    adj_p = _pad2(adj, np_, np_).astype(jnp.bfloat16)
    w1_p = _pad2(w1, fp, hp).astype(jnp.bfloat16)
    b1_p = _pad2(b1, 1, hp).astype(jnp.float32)
    w2_p = _pad2(w2, hp, cp).astype(jnp.bfloat16)
    b2_p = _pad2(b2, 1, cp).astype(jnp.float32)

    h1 = _gcn_layer(x_p, adj_p, w1_p, b1_p, apply_relu=True)    # (Np, Hp) bf16
    # TODO(synk): F.dropout(training=self.training) — identity in eval mode;
    # training-mode masking would use pltpu.prng_seed / prng_random_bits.
    z = _gcn_layer(h1, adj_p, w2_p, b2_p, apply_relu=False)     # (Np, Cp) bf16
    a_pred = _decoder(z)                                        # (Np, Np) f32

    return a_pred[:n, :n]


def init_gc_params(key, fan_in, fan_out):
    """Match GraphConvolution.reset_parameters(): U(-1/sqrt(out), 1/sqrt(out))."""
    stdv = 1.0 / math.sqrt(fan_out)
    kw, kb = jax.random.split(key)
    w = jax.random.uniform(kw, (fan_in, fan_out), jnp.float32, -stdv, stdv)
    b = jax.random.uniform(kb, (1, fan_out), jnp.float32, -stdv, stdv)
    return w, b


def reference_forward(x, adj, w1, b1, w2, b2):
    h1 = jnp.maximum(adj @ (x @ w1) + b1, 0.0)
    z = adj @ (h1 @ w2) + b2
    return jax.nn.sigmoid(z @ z.T)


if __name__ == "__main__":
    # small synthetic graph: N nodes, nfeat features
    N, nfeat, nhid, nclass = 16, 32, 64, 16

    key = jax.random.PRNGKey(0)
    kx, kadj, k1, k2 = jax.random.split(key, 4)

    x = jax.random.normal(kx, (N, nfeat), jnp.float32)

    # symmetric-ish adjacency (dense, with self-loops), row-normalized
    a = jax.random.uniform(kadj, (N, N), jnp.float32)
    a = (a > 0.7).astype(jnp.float32)
    a = jnp.maximum(a, a.T) + jnp.eye(N, dtype=jnp.float32)
    deg = jnp.sum(a, axis=1, keepdims=True)
    adj = a / deg

    w1, b1 = init_gc_params(k1, nfeat, nhid)
    w2, b2 = init_gc_params(k2, nhid, nclass)

    out = gcn_link_forward(x, adj, w1, b1, w2, b2)
    out = jax.block_until_ready(out)

    ref = reference_forward(x, adj, w1, b1, w2, b2)
    assert out.shape == (N, N)
    # bf16 MXU operands with f32 accumulation -> loosened tolerance vs f32 ref
    assert jnp.allclose(out, ref, atol=2e-2, rtol=2e-2)

    print("KERNEL_OK")
</pallas_src>

<mosaic_0001>
module attributes {stable_mosaic.version = 11 : i64} {
  func.func @gcn_layer_kernel(%arg0: i32, %arg1: memref<128x128xbf16, #tpu.memory_space<vmem>>, %arg2: memref<128x128xbf16, #tpu.memory_space<vmem>>, %arg3: memref<1x128xf32, #tpu.memory_space<vmem>>, %arg4: memref<128x128xbf16, #tpu.memory_space<vmem>>, %arg5: memref<128x128xbf16, #tpu.memory_space<vmem>>, %arg6: memref<128x128xbf16, #tpu.memory_space<vmem>>) attributes {dimension_semantics = [#tpu.dimension_semantics<arbitrary>], iteration_bounds = array<i64: 1>, scalar_prefetch = 0 : i64, scratch_operands = 1 : i64, tpu.core_type = #tpu.core_type<tc>, window_params = [{pipeline_mode = #tpu.pipeline_mode<synchronous>, transform_indices = @transform_0, window_bounds = array<i64: 128, 128>}, {pipeline_mode = #tpu.pipeline_mode<synchronous>, transform_indices = @transform_1, window_bounds = array<i64: 128, 128>}, {pipeline_mode = #tpu.pipeline_mode<synchronous>, transform_indices = @transform_2, window_bounds = array<i64: 1, 128>}, {transform_indices = @transform_3, window_bounds = array<i64: 128, 128>}, {transform_indices = @transform_4, window_bounds = array<i64: 128, 128>}]} {
    %c0_i32 = arith.constant 0 : i32
    %0 = arith.cmpi eq, %arg0, %c0_i32 : i32
    %1 = arith.extui %0 : i1 to i32
    %c0_i32_0 = arith.constant 0 : i32
    %2 = arith.cmpi ne, %1, %c0_i32_0 : i32
    scf.if %2 {
      %c0_9 = arith.constant 0 : index
      %c0_10 = arith.constant 0 : index
      %13 = vector.load %arg1[%c0_9, %c0_10] : memref<128x128xbf16, #tpu.memory_space<vmem>>, vector<128x128xbf16>
      %c0_11 = arith.constant 0 : index
      %c0_12 = arith.constant 0 : index
      %14 = vector.load %arg2[%c0_11, %c0_12] : memref<128x128xbf16, #tpu.memory_space<vmem>>, vector<128x128xbf16>
      %cst_13 = arith.constant dense<0.000000e+00> : vector<128x128xf32>
      %15 = tpu.matmul %13, %14, %cst_13 {dimension_numbers = #tpu.dot_dimension_numbers<[1], [0], [0], [1], [0, 0, 1, 1], [], []>} : vector<128x128xbf16>, vector<128x128xbf16>, vector<128x128xf32> -> vector<128x128xf32>
      %16 = arith.truncf %15 : vector<128x128xf32> to vector<128x128xbf16>
      %c0_14 = arith.constant 0 : index
      %c0_15 = arith.constant 0 : index
      %17 = vector.load %arg6[%c0_14, %c0_15] : memref<128x128xbf16, #tpu.memory_space<vmem>>, vector<128x128xbf16>
      tpu.vector_store %arg6[%c0_14, %c0_15], %16 {strides = array<i32>} : memref<128x128xbf16, #tpu.memory_space<vmem>>, vector<128x128xbf16>,
    } else {
    }
    %c0 = arith.constant 0 : index
    %c0_1 = arith.constant 0 : index
    %3 = vector.load %arg4[%c0, %c0_1] : memref<128x128xbf16, #tpu.memory_space<vmem>>, vector<128x128xbf16>
    %c0_2 = arith.constant 0 : index
    %c0_3 = arith.constant 0 : index
    %4 = vector.load %arg6[%c0_2, %c0_3] : memref<128x128xbf16, #tpu.memory_space<vmem>>, vector<128x128xbf16>
    %cst = arith.constant dense<0.000000e+00> : vector<128x128xf32>
    %5 = tpu.matmul %3, %4, %cst {dimension_numbers = #tpu.dot_dimension_numbers<[1], [0], [0], [1], [0, 0, 1, 1], [], []>} : vector<128x128xbf16>, vector<128x128xbf16>, vector<128x128xf32> -> vector<128x128xf32>
    %c0_4 = arith.constant 0 : index
    %c0_5 = arith.constant 0 : index
    %6 = vector.load %arg3[%c0_4, %c0_5] : memref<1x128xf32, #tpu.memory_space<vmem>>, vector<1x128xf32>
    %7 = vector.broadcast %6 : vector<1x128xf32> to vector<128x128xf32>
    %8 = arith.addf %5, %7 : vector<128x128xf32>
    %cst_6 = arith.constant 0.000000e+00 : f32
    %9 = vector.broadcast %cst_6 : f32 to vector<128x128xf32>
    %10 = arith.maximumf %8, %9 : vector<128x128xf32>
    %11 = arith.truncf %10 : vector<128x128xf32> to vector<128x128xbf16>
    %c0_7 = arith.constant 0 : index
    %c0_8 = arith.constant 0 : index
    %12 = vector.load %arg5[%c0_7, %c0_8] : memref<128x128xbf16, #tpu.memory_space<vmem>>, vector<128x128xbf16>
    tpu.vector_store %arg5[%c0_7, %c0_8], %11 {strides = array<i32>} : memref<128x128xbf16, #tpu.memory_space<vmem>>, vector<128x128xbf16>,
    return
  }
  func.func @transform_0(%arg0: i32) -> (i32, i32) {
    %c0_i32 = arith.constant 0 : i32
    %c0_i32_0 = arith.constant 0 : i32
    %c0_i32_1 = arith.constant 0 : i32
    return %c0_i32, %c0_i32_0 : i32, i32
  }
  func.func @transform_1(%arg0: i32) -> (i32, i32) {
    %c0_i32 = arith.constant 0 : i32
    %c0_i32_0 = arith.constant 0 : i32
    %c0_i32_1 = arith.constant 0 : i32
    return %c0_i32, %c0_i32_0 : i32, i32
  }
  func.func @transform_2(%arg0: i32) -> (i32, i32) {
    %c0_i32 = arith.constant 0 : i32
    %c0_i32_0 = arith.constant 0 : i32
    %c0_i32_1 = arith.constant 0 : i32
    return %c0_i32, %c0_i32_0 : i32, i32
  }
  func.func @transform_3(%arg0: i32) -> (i32, i32) {
    %c0_i32 = arith.constant 0 : i32
    %c0_i32_0 = arith.constant 0 : i32
    return %arg0, %c0_i32 : i32, i32
  }
  func.func @transform_4(%arg0: i32) -> (i32, i32) {
    %c0_i32 = arith.constant 0 : i32
    %c0_i32_0 = arith.constant 0 : i32
    return %arg0, %c0_i32 : i32, i32
  }
}

</mosaic_0001>

<bundles_post_ra>
// kernel: tpu_custom_call.1
= control target key start
LH: loop header
LB: loop body
LE: loop exit
PB: predicated region body
PF: predicated region fallthrough
CT: control target
= control target key end

     0   :  { %9 = vsyncpa [#allocation4], 0  ;;  %s1184_s0 = inlined_call_operand.hbm [shape: bf16[128,128], index: 0, kind: input, shape index: {}]   ;;  %s1185_s1 = inlined_call_operand.hbm [shape: bf16[128,128], index: 1, kind: input, shape index: {}]   ;;  %s1186_s2 = inlined_call_operand.vmem [shape: f32[1,128], index: 2, kind: input, shape index: {}]   ;;  %s1187_s3 = inlined_call_operand.hbm [shape: bf16[128,128], index: 3, kind: input, shape index: {}]   ;;  %s1188_s4 = inlined_call_operand.hbm [shape: bf16[128,128], index: 4, kind: output, shape index: {}]  }
   0x1   :  { %10 = vsyncpa [#allocation7], 0 }
   0x2   :  { %11 = vsyncpa [#allocation5], 0  ;;  %s1126_s15 = smov [#allocation6]   ;;  %s1127_s17 = smov [#allocation3]  }
   0x3   :  { %s29_s16 = sshll.u32 %s1126_s15, 4  ;;  %s17_s18 = sshll.u32 %s1127_s17, 4  ;;  %s30_s16 = int_to_ptr.vmem [resolvable:$true] %s29_s16  ;;  %s18_s18 = int_to_ptr.vmem [resolvable:$true] %s17_s18 }
   0x4   :  { %s1048_s19 = scalar_lea.vmem %s30_s16, 1024  ;;  %p1053_p1 = scmp.lt.s32.totalorder %s30_s16, %s30_s16 }
   0x5   :  { %p1049_p0 = scmp.ne.s32.totalorder %s30_s16, %s1048_s19  ;;  %p1054_p2 = scmp.lt.s32.totalorder %s1048_s19, %s1048_s19 }
   0x7   :  { %p1055_p3 = por %p1054_p2, %p1053_p1 }
   0x9   :  { %p1056_p4 = pnand %p1055_p3, %p1049_p0 }
   0xb   :  { %1059 = shalt.err (!%p1056_p4)
}
   0xc   :  { %s1128_s20 = smov 64   ;;  %s1129_s21 = smov 4  }
   0xd   :  { %35 = dma.hbm_to_vmem [thread:$0]  %s1185_s1, 1024, %s30_s16, [#allocation7], %s1128_s20, %s1128_s20, %s1129_s21  }
   0xe   :  { %s1068_s24 = scalar_lea.vmem %s18_s18, 1024  ;;  %p1073_p6 = scmp.lt.s32.totalorder %s18_s18, %s18_s18 }
   0xf   :  { %p1069_p5 = scmp.ne.s32.totalorder %s18_s18, %s1068_s24  ;;  %p1074_p7 = scmp.lt.s32.totalorder %s1068_s24, %s1068_s24 }
  0x11   :  { %p1075_p8 = por %p1074_p7, %p1073_p6 }
  0x13   :  { %p1076_p9 = pnand %p1075_p8, %p1069_p5 }
  0x15   :  { %1079 = shalt.err (!%p1076_p9)
}
  0x16   :  { %23 = dma.hbm_to_vmem [thread:$0]  %s1184_s0, 1024, %s18_s18, [#allocation4], %s1128_s20, %s1128_s20, %s1129_s21  }
  0x17   :  { %s1130_s27 = smov [#allocation8]  }
  0x18   :  { %s43_s28 = sshll.u32 %s1130_s27, 4  ;;  %s44_s28 = int_to_ptr.vmem [resolvable:$true] %s43_s28 }
  0x19   :  { %s1088_s29 = scalar_lea.vmem %s44_s28, 1024  ;;  %p1093_p11 = scmp.lt.s32.totalorder %s44_s28, %s44_s28 }
  0x1a   :  { %p1089_p10 = scmp.ne.s32.totalorder %s44_s28, %s1088_s29  ;;  %p1094_p12 = scmp.lt.s32.totalorder %s1088_s29, %s1088_s29 }
  0x1c   :  { %p1095_p13 = por %p1094_p12, %p1093_p11 }
  0x1e   :  { %p1096_p0 = pnand %p1095_p13, %p1089_p10 }
  0x20   :  { %1099 = shalt.err (!%p1096_p0)
}
  0x21   :  { %49 = dma.hbm_to_vmem [thread:$0]  %s1187_s3, 1024, %s44_s28, [#allocation7], %s1128_s20, %s1128_s20, %s1129_s21  }
  0x22   :  { %1120 = dma.done.wait [#allocation4], 1024  }
  0x23   :  { %1121 = vsyncadd [#allocation4], 4294966272 }
  0x24   :  { %1122 = dma.done.wait [#allocation7], 2048  }
  0x25   :  { %1123 = vsyncadd [#allocation7], 4294965248  ;;  %v1008_v0 = vld [vmem:[#allocation6 + $0x38] sm:$0xff]   ;;  %v1009_v1 = vld [vmem:[#allocation6 + $0x30] sm:$0xff]  }
  0x26   :  { %938 = vmatprep.subr.bf16.mxu0 %v1008_v0  ;;  %v1010_v2 = vld [vmem:[#allocation6 + $0x28] sm:$0xff]   ;;  %v1011_v3 = vld [vmem:[#allocation6 + $0x20] sm:$0xff]   ;;  %v1012_v5 = vld [vmem:[#allocation6 + $0x18] sm:$0xff]  }
  0x27   :  { %939 = vmatpush3.bf16.msra.mxu0 %v1008_v0  ;;  %v1016_v4 = vld [vmem:[#allocation3] sm:$0xff]   ;;  %v1013_v6 = vld [vmem:[#allocation6 + $0x10] sm:$0xff]   ;;  %v1014_v7 = vld [vmem:[#allocation6 + $0x8] sm:$0xff]  }
  0x28   :  { %940 = vmatprep.subr.bf16.mxu0 %v1009_v1  ;;  %954 = vmatprep.mubr.bf16.mxu0 %v1016_v4  ;;  %v1015_v8 = vld [vmem:[#allocation6] sm:$0xff]   ;;  %v1017_v9 = vld [vmem:[#allocation3 + $0x8] sm:$0xff]   ;;  %v1018_v10 = vld [vmem:[#allocation3 + $0x10] sm:$0xff]  }
  0x29   :  { %v1019_v11 = vld [vmem:[#allocation3 + $0x18] sm:$0xff]   ;;  %v1020_v12 = vld [vmem:[#allocation3 + $0x20] sm:$0xff]   ;;  %v1021_v13 = vld [vmem:[#allocation3 + $0x28] sm:$0xff]  }
  0x2a   :  { %v1022_v14 = vld [vmem:[#allocation3 + $0x30] sm:$0xff]   ;;  %v1023_v15 = vld [vmem:[#allocation3 + $0x38] sm:$0xff]   ;;  %v1032_v16 = vld [vmem:[#allocation8] sm:$0xff]  }
  0x2b   :  { %941 = vmatpush3.bf16.msra.mxu0 %v1009_v1  ;;  %986 = vmatprep.mubr.bf16.mxu1 %v1032_v16  ;;  %v1033_v49 = vld [vmem:[#allocation8 + $0x8] sm:$0xff]   ;;  %v1034_v50 = vld [vmem:[#allocation8 + $0x10] sm:$0xff]   ;;  %v1035_v51 = vld [vmem:[#allocation8 + $0x18] sm:$0xff]  }
  0x2c   :  { %942 = vmatprep.subr.bf16.mxu0 %v1010_v2  ;;  %v1036_v52 = vld [vmem:[#allocation8 + $0x20] sm:$0xff]   ;;  %v1037_v53 = vld [vmem:[#allocation8 + $0x28] sm:$0xff]   ;;  %v1038_v54 = vld [vmem:[#allocation8 + $0x30] sm:$0xff]  }
  0x2d   :  { %v1039_v55 = vld [vmem:[#allocation8 + $0x38] sm:$0xff]   ;;  %v747_v57 = vld [vmem:[%s1186_s2] ss:$0 sm:$0xff]  ;;  %s1131_s2 = smov [#allocation9]  }
  0x2e   :  { %s702_s5 = sshll.u32 %s1131_s2, 4  ;;  %s703_s5 = int_to_ptr.vmem [resolvable:$true] %s702_s5 }
  0x2f   :  { %943 = vmatpush3.bf16.msra.mxu0 %v1010_v2  ;;  %s1100_s6 = scalar_lea.vmem %s703_s5, 1024  ;;  %p1105_p2 = scmp.lt.s32.totalorder %s703_s5, %s703_s5 }
  0x30   :  { %944 = vmatprep.subr.bf16.mxu0 %v1011_v3  ;;  %p1101_p1 = scmp.ne.s32.totalorder %s703_s5, %s1100_s6  ;;  %p1106_p3 = scmp.lt.s32.totalorder %s1100_s6, %s1100_s6 }
  0x32   :  { %p1107_p4 = por %p1106_p3, %p1105_p2 }
  0x33   :  { %945 = vmatpush3.bf16.msra.mxu0 %v1011_v3 }
  0x34   :  { %946 = vmatprep.subr.bf16.mxu0 %v1012_v5  ;;  %p1108_p5 = pnand %p1107_p4, %p1101_p1 }
  0x37   :  { %947 = vmatpush3.bf16.msra.mxu0 %v1012_v5 }
  0x38   :  { %948 = vmatprep.subr.bf16.mxu0 %v1013_v6 }
  0x3b   :  { %949 = vmatpush3.bf16.msra.mxu0 %v1013_v6 }
  0x3c   :  { %950 = vmatprep.subr.bf16.mxu0 %v1014_v7 }
  0x3f   :  { %951 = vmatpush3.bf16.msra.mxu0 %v1014_v7 }
  0x40   :  { %952 = vmatprep.subr.bf16.mxu0 %v1015_v8 }
  0x43   :  { %953 = vmatpush3.bf16.msra.mxu0 %v1015_v8 }
  0x46   :  { %955 = vmatmul.mubr.bf16.vlgmr.msra.gmra.mxu0 %v1017_v9 }
  0x47   :  { %958 = vmatprep.mubr.bf16.mxu0 %v1018_v10 }
  0x4e   :  { %959 = vmatmul.mubr.bf16.gmra.mxu0 %v1019_v11 }
  0x4f   :  { %962 = vmatprep.mubr.bf16.mxu0 %v1020_v12 }
  0x56   :  { %963 = vmatmul.mubr.bf16.gmra.mxu0 %v1021_v13 }
  0x57   :  { %966 = vmatprep.mubr.bf16.mxu0 %v1022_v14 }
  0x5e   :  { %967 = vmatmul.mubr.bf16.gmra.mxu0 %v1023_v15 }
 0x106   :  { %v956_v17 = vpop.f32.mrf.mxu0 }
 0x108   :  { %v226_v18 = vpop.f32.mrf.mxu0 }
 0x10a   :  { %v957_v19 = vpop.f32.mrf.mxu0 }
 0x10b   :  { %v820_v20 = vpack.c.bf16 %v957_v19, %v956_v17 }
 0x10c   :  { %v229_v21 = vpop.f32.mrf.mxu0 }
 0x10d   :  { %892 = vst [vmem:[#allocation2 + $0x8] sm:$0xff] %v820_v20   ;;  %v815_v22 = vpack.c.bf16 %v229_v21, %v226_v18 }
 0x10e   :  { %v960_v23 = vpop.f32.mrf.mxu0 }
 0x10f   :  { %816 = vst [vmem:[#allocation2] sm:$0xff] %v815_v22  }
 0x110   :  { %v242_v24 = vpop.f32.mrf.mxu0 }
 0x112   :  { %v961_v25 = vpop.f32.mrf.mxu0 }
 0x113   :  { %v830_v26 = vpack.c.bf16 %v961_v25, %v960_v23 }
 0x114   :  { %v245_v27 = vpop.f32.mrf.mxu0  ;;  %v1030_v47 = vld [vmem:[#allocation2 + $0x8] sm:$0xff]  }
 0x115   :  { %894 = vst [vmem:[#allocation2 + $0x18] sm:$0xff] %v830_v26   ;;  %v825_v28 = vpack.c.bf16 %v245_v27, %v242_v24 }
 0x116   :  { %v964_v29 = vpop.f32.mrf.mxu0  ;;  %v1031_v48 = vld [vmem:[#allocation2] sm:$0xff]  }
 0x117   :  { %893 = vst [vmem:[#allocation2 + $0x10] sm:$0xff] %v825_v28  }
 0x118   :  { %v258_v30 = vpop.f32.mrf.mxu0 }
 0x11a   :  { %v965_v31 = vpop.f32.mrf.mxu0 }
 0x11b   :  { %v840_v32 = vpack.c.bf16 %v965_v31, %v964_v29 }
 0x11c   :  { %v261_v33 = vpop.f32.mrf.mxu0  ;;  %v1028_v45 = vld [vmem:[#allocation2 + $0x18] sm:$0xff]  }
 0x11d   :  { %896 = vst [vmem:[#allocation2 + $0x28] sm:$0xff] %v840_v32   ;;  %v835_v34 = vpack.c.bf16 %v261_v33, %v258_v30 }
 0x11e   :  { %v968_v35 = vpop.f32.mrf.mxu0  ;;  %v1029_v46 = vld [vmem:[#allocation2 + $0x10] sm:$0xff]  }
 0x11f   :  { %895 = vst [vmem:[#allocation2 + $0x20] sm:$0xff] %v835_v34  }
 0x120   :  { %v274_v36 = vpop.f32.mrf.mxu0 }
 0x122   :  { %v969_v37 = vpop.f32.mrf.mxu0 }
 0x123   :  { %v850_v38 = vpack.c.bf16 %v969_v37, %v968_v35 }
 0x124   :  { %v277_v39 = vpop.f32.mrf.mxu0  ;;  %v1026_v43 = vld [vmem:[#allocation2 + $0x28] sm:$0xff]  }
 0x125   :  { %898 = vst [vmem:[#allocation2 + $0x38] sm:$0xff] %v850_v38   ;;  %v845_v40 = vpack.c.bf16 %v277_v39, %v274_v36 }
 0x126   :  { %v1027_v44 = vld [vmem:[#allocation2 + $0x20] sm:$0xff]  }
 0x127   :  { %897 = vst [vmem:[#allocation2 + $0x30] sm:$0xff] %v845_v40  }
 0x12c   :  { %v1024_v41 = vld [vmem:[#allocation2 + $0x38] sm:$0xff]  }
 0x12d   :  { %970 = vmatprep.subr.bf16.mxu1 %v1024_v41 }
 0x12e   :  { %v1025_v42 = vld [vmem:[#allocation2 + $0x30] sm:$0xff]   ;;  %971 = vmatpush3.bf16.msra.mxu1 %v1024_v41 }
 0x12f   :  { %972 = vmatprep.subr.bf16.mxu1 %v1025_v42 }
 0x132   :  { %973 = vmatpush3.bf16.msra.mxu1 %v1025_v42 }
 0x133   :  { %974 = vmatprep.subr.bf16.mxu1 %v1026_v43 }
 0x136   :  { %975 = vmatpush3.bf16.msra.mxu1 %v1026_v43 }
 0x137   :  { %976 = vmatprep.subr.bf16.mxu1 %v1027_v44 }
 0x13a   :  { %977 = vmatpush3.bf16.msra.mxu1 %v1027_v44 }
 0x13b   :  { %978 = vmatprep.subr.bf16.mxu1 %v1028_v45 }
 0x13e   :  { %979 = vmatpush3.bf16.msra.mxu1 %v1028_v45 }
 0x13f   :  { %980 = vmatprep.subr.bf16.mxu1 %v1029_v46 }
 0x142   :  { %981 = vmatpush3.bf16.msra.mxu1 %v1029_v46 }
 0x143   :  { %982 = vmatprep.subr.bf16.mxu1 %v1030_v47 }
 0x146   :  { %983 = vmatpush3.bf16.msra.mxu1 %v1030_v47 }
 0x147   :  { %984 = vmatprep.subr.bf16.mxu1 %v1031_v48 }
 0x14a   :  { %985 = vmatpush3.bf16.msra.mxu1 %v1031_v48 }
 0x14d   :  { %987 = vmatmul.mubr.bf16.vlgmr.msra.gmra.mxu1 %v1033_v49 }
 0x14e   :  { %990 = vmatprep.mubr.bf16.mxu1 %v1034_v50 }
 0x155   :  { %991 = vmatmul.mubr.bf16.gmra.mxu1 %v1035_v51 }
 0x156   :  { %994 = vmatprep.mubr.bf16.mxu1 %v1036_v52 }
 0x15d   :  { %995 = vmatmul.mubr.bf16.gmra.mxu1 %v1037_v53 }
 0x15e   :  { %998 = vmatprep.mubr.bf16.mxu1 %v1038_v54 }
 0x165   :  { %999 = vmatmul.mubr.bf16.gmra.mxu1 %v1039_v55 }
 0x20d   :  { %v988_v56 = vpop.f32.mrf.mxu1 }
 0x20e   :  { %v547_v59 = vadd.f32 %v988_v56, %v747_v57 }
 0x20f   :  { %v538_v58 = vpop.f32.mrf.mxu1 }
 0x210   :  { %v539_v61 = vadd.f32 %v747_v57, %v538_v58  ;;  %v603_v0 = vmax.f32 %v547_v59, 0.0 }
 0x211   :  { %v989_v60 = vpop.f32.mrf.mxu1 }
 0x212   :  { %v550_v62 = vadd.f32 %v989_v60, %v747_v57  ;;  %v601_v4 = vmax.f32 %v539_v61, 0.0 }
 0x213   :  { %v541_v63 = vpop.f32.mrf.mxu1 }
 0x214   :  { %v604_v1 = vmax.f32 %v550_v62, 0.0  ;;  %v542_v2 = vadd.f32 %v747_v57, %v541_v63 }
 0x215   :  { %v992_v3 = vpop.f32.mrf.mxu1 }
 0x216   :  { %v860_v5 = vpack.c.bf16 %v604_v1, %v603_v0  ;;  %v602_v6 = vmax.f32 %v542_v2, 0.0  ;;  %v563_v9 = vadd.f32 %v992_v3, %v747_v57 }
 0x217   :  { %v554_v7 = vpop.f32.mrf.mxu1 }
 0x218   :  { %899 = vst [vmem:[#allocation9 + $0x8] sm:$0xff] %v860_v5   ;;  %v855_v8 = vpack.c.bf16 %v602_v6, %v601_v4  ;;  %v555_v11 = vadd.f32 %v747_v57, %v554_v7  ;;  %v607_v14 = vmax.f32 %v563_v9, 0.0 }
 0x219   :  { %v993_v10 = vpop.f32.mrf.mxu1 }
 0x21a   :  { %856 = vst [vmem:[#allocation9] sm:$0xff] %v855_v8   ;;  %v566_v12 = vadd.f32 %v993_v10, %v747_v57  ;;  %v605_v18 = vmax.f32 %v555_v11, 0.0 }
 0x21b   :  { %v557_v13 = vpop.f32.mrf.mxu1 }
 0x21c   :  { %v608_v15 = vmax.f32 %v566_v12, 0.0  ;;  %v558_v16 = vadd.f32 %v747_v57, %v557_v13 }
 0x21d   :  { %v996_v17 = vpop.f32.mrf.mxu1 }
 0x21e   :  { %v870_v19 = vpack.c.bf16 %v608_v15, %v607_v14  ;;  %v606_v20 = vmax.f32 %v558_v16, 0.0  ;;  %v579_v23 = vadd.f32 %v996_v17, %v747_v57 }
 0x21f   :  { %v570_v21 = vpop.f32.mrf.mxu1 }
 0x220   :  { %901 = vst [vmem:[#allocation9 + $0x18] sm:$0xff] %v870_v19   ;;  %v865_v22 = vpack.c.bf16 %v606_v20, %v605_v18  ;;  %v571_v25 = vadd.f32 %v747_v57, %v570_v21  ;;  %v611_v28 = vmax.f32 %v579_v23, 0.0 }
 0x221   :  { %v997_v24 = vpop.f32.mrf.mxu1 }
 0x222   :  { %900 = vst [vmem:[#allocation9 + $0x10] sm:$0xff] %v865_v22   ;;  %v582_v26 = vadd.f32 %v997_v24, %v747_v57  ;;  %v609_v32 = vmax.f32 %v571_v25, 0.0 }
 0x223   :  { %v573_v27 = vpop.f32.mrf.mxu1 }
 0x224   :  { %v612_v29 = vmax.f32 %v582_v26, 0.0  ;;  %v574_v30 = vadd.f32 %v747_v57, %v573_v27 }
 0x225   :  { %v1000_v31 = vpop.f32.mrf.mxu1 }
 0x226   :  { %v880_v33 = vpack.c.bf16 %v612_v29, %v611_v28  ;;  %v610_v34 = vmax.f32 %v574_v30, 0.0  ;;  %v595_v37 = vadd.f32 %v1000_v31, %v747_v57 }
 0x227   :  { %v586_v35 = vpop.f32.mrf.mxu1 }
 0x228   :  { %903 = vst [vmem:[#allocation9 + $0x28] sm:$0xff] %v880_v33   ;;  %v875_v36 = vpack.c.bf16 %v610_v34, %v609_v32  ;;  %v587_v39 = vadd.f32 %v747_v57, %v586_v35  ;;  %v615_v42 = vmax.f32 %v595_v37, 0.0 }
 0x229   :  { %v1001_v38 = vpop.f32.mrf.mxu1 }
 0x22a   :  { %902 = vst [vmem:[#allocation9 + $0x20] sm:$0xff] %v875_v36   ;;  %v598_v40 = vadd.f32 %v1001_v38, %v747_v57  ;;  %v613_v45 = vmax.f32 %v587_v39, 0.0 }
 0x22b   :  { %v589_v41 = vpop.f32.mrf.mxu1 }
 0x22c   :  { %v616_v43 = vmax.f32 %v598_v40, 0.0  ;;  %v590_v44 = vadd.f32 %v747_v57, %v589_v41 }
 0x22e   :  { %v890_v46 = vpack.c.bf16 %v616_v43, %v615_v42  ;;  %v614_v47 = vmax.f32 %v590_v44, 0.0 }
 0x230   :  { %905 = vst [vmem:[#allocation9 + $0x38] sm:$0xff] %v890_v46   ;;  %v885_v48 = vpack.c.bf16 %v614_v47, %v613_v45 }
 0x232   :  { %904 = vst [vmem:[#allocation9 + $0x30] sm:$0xff] %v885_v48  }
 0x233   :  { %1111 = shalt.err (!%p1108_p5)
}
 0x234   :  { %708 = dma.vmem_to_hbm [thread:$0]  %s703_s5, 1024, %s1188_s4, [#allocation5], %s1128_s20, %s1128_s20, %s1129_s21  }
 0x235   :  { %1124 = dma.done.wait [#allocation5], 1024  }
 0x236   :  { %1125 = vsyncadd [#allocation5], 4294966272 }
 0x237   :  { %712 = vsyncpa [#allocation4], 1 }
 0x238   :  { %713 = vsyncpa [#allocation7], 1 }
 0x239   :  { %714 = vsyncpa [#allocation5], 1 }

</bundles_post_ra>
